<compile_context>
chip_gen: v5e
topology: v5e:2x2
jax: 0.10.0
libtpu: 0.0.40
codegen_flags: <defaults>
</compile_context>

<pallas_src>
import functools

import jax
import jax.numpy as jnp
from jax.experimental import pallas as pl
from jax.experimental.pallas import tpu as pltpu


def _round_down(v, m):
    return (v // m) * m


def _tpu_generation_params():
    """Returns (per_buffer_target_bytes, vmem_budget_bytes, vmem_limit_bytes, n_parallel_cores)."""
    kind = ""
    try:
        kind = jax.devices()[0].device_kind.lower()
    except Exception:
        pass
    if "v7" in kind or "7x" in kind:
        # v7x: 3.2 TB/s HBM -> bigger tiles amortize the ~0.35us/step overhead,
        # but only 64 MiB physical VMEM/TC -> raise the scoped limit explicitly
        # and keep 2*tile + acc well under it.
        return (12 << 20), (48 << 20), (48 << 20), 2
    if "v6" in kind:
        # v6e: 2 x 8 MiB + acc fits the 32 MiB default scoped VMEM.
        return (8 << 20), (32 << 20), None, 1
    # v5e and unknown generations: stay inside the 16 MiB default scoped VMEM.
    return (4 << 20), (16 << 20), None, 1


def _aggregate_head_kernel(x_ref, w_ref, b_ref, o_ref, acc_ref, *,
                           inv_scale, seq_len, block_s, mask_seq):
    # x_ref: (TB, TS, De)  w_ref: (1, De)  b_ref: (1, 1)
    # o_ref: (TB, 1)       acc_ref: (TB, De) f32 scratch, resident across S steps
    s = pl.program_id(1)
    n_s = pl.num_programs(1)

    @pl.when(s == 0)
    def _init():
        acc_ref[...] = jnp.zeros_like(acc_ref)

    if mask_seq:
        # Interior tiles: keep the hot loop a pure f32 add (no iota/cmp/select).
        @pl.when(s < n_s - 1)
        def _interior():
            acc_ref[...] += jnp.sum(x_ref[...].astype(jnp.float32), axis=1)

        # Last (remainder) tile only: mask rows past the true sequence length.
        @pl.when(s == n_s - 1)
        def _edge():
            tb, ts, d = x_ref.shape
            row = s * block_s + jax.lax.broadcasted_iota(jnp.int32, (tb, ts, d), 1)
            x = jnp.where(row < seq_len, x_ref[...].astype(jnp.float32), 0.0)
            acc_ref[...] += jnp.sum(x, axis=1)
    else:
        acc_ref[...] += jnp.sum(x_ref[...].astype(jnp.float32), axis=1)

    @pl.when(s == n_s - 1)
    def _finalize():
        # Linear(D, 1) as a VPU broadcast-multiply + lane reduction (no MXU pass
        # wasted on a single output column); mean scale folded into (TB, 1).
        w = w_ref[...].astype(jnp.float32)                        # (1, De)
        y = jnp.sum(acc_ref[...] * w, axis=-1, keepdims=True)     # (TB, 1)
        y = y * inv_scale + b_ref[...]
        o_ref[...] = y.astype(o_ref.dtype)
        # TODO(synk): emit a lane-dense (1, TB) output block (transpose in the
        # wrapper) so the final store is an unmasked vst instead of 1-lane.


def aggregate_head(x, weight, bias, aggr="mean", *, block_b=None, block_s=None):
    """x: (B, S, D); weight: (1, D) [PyTorch Linear layout]; bias: (1,). Returns (B, 1)."""
    B, S, D = x.shape
    assert weight.shape == (1, D) and bias.shape == (1,)
    inv_scale = (1.0 / S) if aggr == "mean" else 1.0

    target_bytes, vmem_budget, vmem_limit, n_cores = _tpu_generation_params()

    itemsize = jnp.dtype(x.dtype).itemsize
    # dtype sublane packing: f32 -> 8, bf16 -> 16, int8/fp8 -> 32
    sublane = max(8, 32 // itemsize)

    # ---- lane-densify small D ----------------------------------------------
    # For D < 128 every (.., D) tile wastes 128-D lanes; pack k = 128//D
    # consecutive sequence rows into one 128-lane row (x is contiguous, so the
    # reshape is free) and tile the weight k times -> the finalize dot, sum and
    # 1/S scale are unchanged.
    k = 1
    if D < 128 and 128 % D == 0 and S % (128 // D) == 0:
        k = 128 // D
    # TODO(synk): handle D < 128 with S % (128 // D) != 0 (needs a ragged tail).
    if k > 1:
        x = x.reshape(B, S // k, k * D)
        weight_eff = jnp.tile(weight, (1, k))
    else:
        weight_eff = weight
    S_eff = S // k
    D_eff = k * D

    # ---- tile sizes (byte-budgeted, generation aware) ------------------------
    if block_b is None:
        block_b = min(B, 128)
        # v7x megacore: keep the "parallel" batch axis at >= 2 tiles so both
        # TensorCores get work.
        if n_cores >= 2 and B >= 16:
            block_b = min(block_b, max(8, _round_down(B // 2, 8)))
    block_b = min(block_b, B)

    def _s_for(bb):
        # Largest sublane-multiple block_s whose (bb, bs, D_eff) tile fits the
        # per-buffer byte target (or the full S_eff).
        cand = target_bytes // max(bb * D_eff * itemsize, 1)
        cand = _round_down(cand, sublane)
        return S_eff if cand >= S_eff else cand   # may be 0 -> shrink block_b

    if block_s is None:
        # Grow block_s before block_b (longer contiguous HBM runs, smaller acc);
        # shrink block_b first when the byte budget is tight.
        preferred_min_bs = min(S_eff, 8 * sublane)
        bs = _s_for(block_b)
        while block_b > 8 and bs < preferred_min_bs:
            block_b = max(8, _round_down(block_b // 2, 8))
            bs = _s_for(block_b)
        block_s = bs if bs >= min(S_eff, sublane) else min(S_eff, sublane)
    else:
        block_s = S_eff if block_s >= S_eff else max(sublane, _round_down(block_s, sublane))

    # ---- enforce the VMEM budget (2 x double-buffered x tile + accumulator) --
    def _need(bb, bs):
        tile = bb * bs * D_eff * itemsize
        acc = bb * D_eff * 4
        small = 2 * (D_eff * 4 + 4 + bb * itemsize)   # w, b, out (double-buffered)
        return 2 * tile + acc + small

    while _need(block_b, block_s) > vmem_budget and block_s > min(S_eff, sublane):
        block_s = max(min(S_eff, sublane), _round_down(block_s // 2, sublane))
    while _need(block_b, block_s) > vmem_budget and block_b > min(B, 8):
        block_b = max(min(B, 8), _round_down(block_b // 2, 8))
    assert _need(block_b, block_s) <= vmem_budget, (
        f"AggregateHead tile ({block_b},{block_s},{D_eff}) exceeds the "
        f"{vmem_budget >> 20} MiB VMEM budget")

    mask_seq = (S_eff % block_s) != 0
    grid = (pl.cdiv(B, block_b), pl.cdiv(S_eff, block_s))

    # x BlockSpec; on v7x, if VMEM pressure forced small tiles, go 3-deep to
    # hide DMA-issue latency at 3.2 TB/s.
    tile_bytes = block_b * block_s * D_eff * itemsize
    x_index_map = lambda b, s: (b, s, 0)
    if (n_cores >= 2 and tile_bytes <= (4 << 20) and grid[1] >= 4
            and _need(block_b, block_s) + tile_bytes <= vmem_budget):
        x_spec = pl.BlockSpec((block_b, block_s, D_eff), x_index_map,
                              pipeline_mode=pl.Buffered(3))
    else:
        x_spec = pl.BlockSpec((block_b, block_s, D_eff), x_index_map)

    bias2 = bias.reshape(1, 1)
    kernel = functools.partial(
        _aggregate_head_kernel,
        inv_scale=inv_scale, seq_len=S_eff, block_s=block_s, mask_seq=mask_seq)

    cost = pl.CostEstimate(
        flops=2 * B * S * D + 2 * B * D,
        transcendentals=0,
        bytes_accessed=B * S * D * itemsize + D * 4 + 4 + B * itemsize,
    )

    return pl.pallas_call(
        kernel,
        out_shape=jax.ShapeDtypeStruct((B, 1), x.dtype),
        grid_spec=pltpu.PrefetchScalarGridSpec(
            num_scalar_prefetch=0,
            grid=grid,
            in_specs=[
                x_spec,
                pl.BlockSpec((1, D_eff), lambda b, s: (0, 0)),
                pl.BlockSpec((1, 1), lambda b, s: (0, 0)),
            ],
            # Same output block across the S axis -> stays resident; only the
            # final S step stores it.
            out_specs=pl.BlockSpec((block_b, 1), lambda b, s: (b, 0)),
            scratch_shapes=[pltpu.VMEM((block_b, D_eff), jnp.float32)],
        ),
        compiler_params=pltpu.CompilerParams(
            dimension_semantics=("parallel", "arbitrary"),
            vmem_limit_bytes=vmem_limit),
        cost_estimate=cost,
    )(x, weight_eff, bias2)


if __name__ == "__main__":
    key = jax.random.PRNGKey(0)
    kx, kw, kb, kx2, kx3, kw3, kb3 = jax.random.split(key, 7)

    # Case 1: small shapes consistent with the module (batch=2, seq=8, embed_dim=32).
    B, S, D = 2, 8, 32
    x = jax.random.normal(kx, (B, S, D), dtype=jnp.float32)
    weight = jax.random.normal(kw, (1, D), dtype=jnp.float32) * 0.1   # Linear(D, 1)
    bias = jax.random.normal(kb, (1,), dtype=jnp.float32) * 0.1

    out_mean = aggregate_head(x, weight, bias, aggr="mean")
    out_sum = aggregate_head(x, weight, bias, aggr="sum")
    jax.block_until_ready((out_mean, out_sum))

    ref_mean = jnp.mean(x, axis=1) @ weight.T + bias
    ref_sum = jnp.sum(x, axis=1) @ weight.T + bias
    assert out_mean.shape == (B, 1) and out_sum.shape == (B, 1)
    assert jnp.allclose(out_mean, ref_mean, atol=1e-5, rtol=1e-5)
    assert jnp.allclose(out_sum, ref_sum, atol=1e-5, rtol=1e-5)

    # Case 2: multiple streamed S tiles with a masked remainder (edge) tile.
    # D=32 is lane-packed k=4 -> S_eff=10; block_s=8 -> interior + edge path.
    B2, S2 = 4, 40
    x2 = jax.random.normal(kx2, (B2, S2, D), dtype=jnp.float32)
    out2 = aggregate_head(x2, weight, bias, aggr="mean", block_s=8)
    jax.block_until_ready(out2)
    ref2 = jnp.mean(x2, axis=1) @ weight.T + bias
    assert out2.shape == (B2, 1)
    assert jnp.allclose(out2, ref2, atol=1e-5, rtol=1e-5)

    # Case 3: bf16 input, D >= 128 (no packing), sum aggregation (16-row sublane packing).
    B3, S3, D3 = 4, 48, 128
    x3 = jax.random.normal(kx3, (B3, S3, D3), dtype=jnp.bfloat16)
    w3 = (jax.random.normal(kw3, (1, D3), dtype=jnp.float32) * 0.1).astype(jnp.bfloat16)
    b3 = (jax.random.normal(kb3, (1,), dtype=jnp.float32) * 0.1).astype(jnp.bfloat16)
    out3 = aggregate_head(x3, w3, b3, aggr="sum")
    jax.block_until_ready(out3)
    ref3 = (jnp.sum(x3.astype(jnp.float32), axis=1) @ w3.astype(jnp.float32).T
            + b3.astype(jnp.float32))
    assert out3.shape == (B3, 1)
    assert jnp.allclose(out3.astype(jnp.float32), ref3, atol=0.15, rtol=0.05)

    print("KERNEL_OK")
</pallas_src>

<mosaic_0001>
module attributes {stable_mosaic.version = 11 : i64} {
  func.func @_aggregate_head_kernel(%arg0: i32, %arg1: i32, %arg2: memref<2x2x128xf32, #tpu.memory_space<vmem>>, %arg3: memref<1x128xf32, #tpu.memory_space<vmem>>, %arg4: memref<1x1xf32, #tpu.memory_space<vmem>>, %arg5: memref<2x1xf32, #tpu.memory_space<vmem>>, %arg6: memref<2x128xf32, #tpu.memory_space<vmem>>) attributes {dimension_semantics = [#tpu.dimension_semantics<parallel>, #tpu.dimension_semantics<arbitrary>], iteration_bounds = array<i64: 1, 1>, scalar_prefetch = 0 : i64, scratch_operands = 1 : i64, tpu.core_type = #tpu.core_type<tc>, window_params = [{transform_indices = @transform_0, window_bounds = array<i64: 2, 2, 128>}, {pipeline_mode = #tpu.pipeline_mode<synchronous>, transform_indices = @transform_1, window_bounds = array<i64: 1, 128>}, {pipeline_mode = #tpu.pipeline_mode<synchronous>, transform_indices = @transform_2, window_bounds = array<i64: 1, 1>}, {transform_indices = @transform_3, window_bounds = array<i64: 2, 1>}]} {
    %c0_i32 = arith.constant 0 : i32
    %0 = arith.cmpi eq, %arg1, %c0_i32 : i32
    %1 = arith.extui %0 : i1 to i32
    %c0_i32_0 = arith.constant 0 : i32
    %2 = arith.cmpi ne, %1, %c0_i32_0 : i32
    scf.if %2 {
      %cst_9 = arith.constant 0.000000e+00 : f32
      %11 = vector.broadcast %cst_9 : f32 to vector<2x128xf32>
      %c0_10 = arith.constant 0 : index
      %c0_11 = arith.constant 0 : index
      %12 = vector.load %arg6[%c0_10, %c0_11] : memref<2x128xf32, #tpu.memory_space<vmem>>, vector<2x128xf32>
      tpu.vector_store %arg6[%c0_10, %c0_11], %11 {strides = array<i32>} : memref<2x128xf32, #tpu.memory_space<vmem>>, vector<2x128xf32>,
    } else {
    }
    %c0 = arith.constant 0 : index
    %c0_1 = arith.constant 0 : index
    %3 = vector.load %arg6[%c0, %c0_1] : memref<2x128xf32, #tpu.memory_space<vmem>>, vector<2x128xf32>
    %c0_2 = arith.constant 0 : index
    %c0_3 = arith.constant 0 : index
    %c0_4 = arith.constant 0 : index
    %4 = vector.load %arg2[%c0_2, %c0_3, %c0_4] : memref<2x2x128xf32, #tpu.memory_space<vmem>>, vector<2x2x128xf32>
    %cst = arith.constant dense<0.000000e+00> : vector<2x128xf32>
    %5 = vector.multi_reduction <add>, %4, %cst [1] : vector<2x2x128xf32> to vector<2x128xf32>
    %6 = arith.addf %3, %5 : vector<2x128xf32>
    %c0_5 = arith.constant 0 : index
    %c0_6 = arith.constant 0 : index
    %7 = vector.load %arg6[%c0_5, %c0_6] : memref<2x128xf32, #tpu.memory_space<vmem>>, vector<2x128xf32>
    tpu.vector_store %arg6[%c0_5, %c0_6], %6 {strides = array<i32>} : memref<2x128xf32, #tpu.memory_space<vmem>>, vector<2x128xf32>,
    %c0_i32_7 = arith.constant 0 : i32
    %8 = arith.cmpi eq, %arg1, %c0_i32_7 : i32
    %9 = arith.extui %8 : i1 to i32
    %c0_i32_8 = arith.constant 0 : i32
    %10 = arith.cmpi ne, %9, %c0_i32_8 : i32
    scf.if %10 {
      %c0_9 = arith.constant 0 : index
      %c0_10 = arith.constant 0 : index
      %11 = vector.load %arg3[%c0_9, %c0_10] : memref<1x128xf32, #tpu.memory_space<vmem>>, vector<1x128xf32>
      %c0_11 = arith.constant 0 : index
      %c0_12 = arith.constant 0 : index
      %12 = vector.load %arg6[%c0_11, %c0_12] : memref<2x128xf32, #tpu.memory_space<vmem>>, vector<2x128xf32>
      %13 = vector.broadcast %11 : vector<1x128xf32> to vector<2x128xf32>
      %14 = arith.mulf %12, %13 : vector<2x128xf32>
      %cst_13 = arith.constant dense<0.000000e+00> : vector<2xf32>
      %15 = vector.multi_reduction <add>, %14, %cst_13 [1] : vector<2x128xf32> to vector<2xf32>
      %16 = vector.shape_cast %15 : vector<2xf32> to vector<2x1xf32>
      %cst_14 = arith.constant 1.250000e-01 : f32
      %17 = vector.broadcast %cst_14 : f32 to vector<2x1xf32>
      %18 = arith.mulf %16, %17 : vector<2x1xf32>
      %c0_15 = arith.constant 0 : index
      %c0_16 = arith.constant 0 : index
      %19 = vector.load %arg4[%c0_15, %c0_16] : memref<1x1xf32, #tpu.memory_space<vmem>>, vector<1x1xf32>
      %20 = vector.broadcast %19 : vector<1x1xf32> to vector<2x1xf32>
      %21 = arith.addf %18, %20 : vector<2x1xf32>
      %c0_17 = arith.constant 0 : index
      %c0_18 = arith.constant 0 : index
      %22 = vector.load %arg5[%c0_17, %c0_18] : memref<2x1xf32, #tpu.memory_space<vmem>>, vector<2x1xf32>
      tpu.vector_store %arg5[%c0_17, %c0_18], %21 {strides = array<i32>} : memref<2x1xf32, #tpu.memory_space<vmem>>, vector<2x1xf32>,
    } else {
    }
    return
  }
  func.func @transform_0(%arg0: i32, %arg1: i32) -> (i32, i32, i32) {
    %c0_i32 = arith.constant 0 : i32
    %c0_i32_0 = arith.constant 0 : i32
    return %arg0, %arg1, %c0_i32 : i32, i32, i32
  }
  func.func @transform_1(%arg0: i32, %arg1: i32) -> (i32, i32) {
    %c0_i32 = arith.constant 0 : i32
    %c0_i32_0 = arith.constant 0 : i32
    %c0_i32_1 = arith.constant 0 : i32
    return %c0_i32, %c0_i32_0 : i32, i32
  }
  func.func @transform_2(%arg0: i32, %arg1: i32) -> (i32, i32) {
    %c0_i32 = arith.constant 0 : i32
    %c0_i32_0 = arith.constant 0 : i32
    %c0_i32_1 = arith.constant 0 : i32
    return %c0_i32, %c0_i32_0 : i32, i32
  }
  func.func @transform_3(%arg0: i32, %arg1: i32) -> (i32, i32) {
    %c0_i32 = arith.constant 0 : i32
    %c0_i32_0 = arith.constant 0 : i32
    return %arg0, %c0_i32 : i32, i32
  }
}

</mosaic_0001>

<bundles_post_ra>
// kernel: tpu_custom_call.1
= control target key start
LH: loop header
LB: loop body
LE: loop exit
PB: predicated region body
PF: predicated region fallthrough
CT: control target
= control target key end

     0   :  { %s158_s0 = inlined_call_operand.hbm [shape: f32[2,2,128], index: 0, kind: input, shape index: {}]   ;;  %s159_s1 = inlined_call_operand.vmem [shape: f32[1,128], index: 1, kind: input, shape index: {}]   ;;  %s160_s2 = inlined_call_operand.<no memory space> [shape: f32[1,1], index: 2, kind: input, shape index: {}]   ;;  %s161_s3 = inlined_call_operand.vmem [shape: f32[2,1], index: 3, kind: output, shape index: {}]  }
   0x1   :  { %v8_v0 = vstv %s160_s2 }
   0x2   :  { %9 = vst [vmem:[#allocation3] sm:$0x1] %v8_v0 }
   0x3   :  { %10 = vsyncpa [#allocation5], 0  ;;  %s15_s16 = sshll.u32 %s158_s0, 4  ;;  %s119_s17 = smov [#allocation4]   ;;  %s16_s16 = int_to_ptr.hbm [resolvable:$true] %s15_s16 }
   0x4   :  { %s17_s18 = sshll.u32 %s119_s17, 4  ;;  %s120_s19 = smov 32   ;;  %s18_s18 = int_to_ptr.vmem [resolvable:$true] %s17_s18 }
   0x5   :  { %s121_s20 = smov 2  }
   0x6   :  { %23 = dma.hbm_to_vmem [thread:$0]  %s16_s16, 64, %s18_s18, [#allocation5], %s120_s19, %s120_s19, %s121_s20  }
   0x7   :  { %117 = dma.done.wait [#allocation5], 64  }
   0x8   :  { %118 = vsyncadd [#allocation5], 4294967232  ;;  %v122_v1 = vmov 0.0   ;;  %vm40_vm0 = vcmask 1041408   ;;  %v38_v2 = vld [vmem:[#allocation4] sm:$0x3] }
   0x9   :  { %36 = vst [vmem:[#allocation2] sm:$0x3] %v122_v1  ;;  %v39_v3 = vld [vmem:[#allocation4 + $0x2] sm:$0x3]  ;;  %v41_v4 = vsel %vm40_vm0, %v38_v2, 0.0  ;;  %vm57_vm1 = vcmask 1041409  }
   0xa   :  { %v48_v5 = vsel %vm40_vm0, %v39_v3, 0.0  ;;  %v42_v6 = vrot.slane %v41_v4, 4  ;;  %v91_v21 = vld [vmem:[%s159_s1] ss:$0 sm:$0xff]  ;;  %v92_v25 = vld [vmem:[#allocation3] ss:$0 sm:$0xff] }
   0xb   :  { %v49_v7 = vrot.slane %v48_v5, 4  ;;  %vm80_vm2 = vcmask 1024  }
   0xc   :  { %v43_v8 = vadd.f32 %v42_v6, %v41_v4 }
   0xd   :  { %v50_v9 = vadd.f32 %v49_v7, %v48_v5 }
   0xe   :  { %v44_v10 = vrot.slane %v43_v8, 2 }
   0xf   :  { %v51_v11 = vrot.slane %v50_v9, 2 }
  0x10   :  { %v45_v12 = vadd.f32 %v44_v10, %v43_v8  ;;  %v37_v16 = vld [vmem:[#allocation2] sm:$0x3] }
  0x11   :  { %v52_v13 = vadd.f32 %v51_v11, %v50_v9 }
  0x12   :  { %v46_v14 = vrot.slane %v45_v12, 1 }
  0x13   :  { %v53_v15 = vrot.slane %v52_v13, 1 }
  0x14   :  { %v47_v17 = vadd.f32 %v46_v14, %v45_v12 }
  0x15   :  { %v54_v18 = vadd.f32 %v53_v15, %v52_v13 }
  0x17   :  { %v58_v19 = vsel %vm57_vm1, %v54_v18, %v47_v17 }
  0x18   :  { %v60_v20 = vadd.f32 %v58_v19, %v37_v16 }
  0x1a   :  { %61 = vst [vmem:[#allocation2] sm:$0x3] %v60_v20 }
  0x21   :  { %v66_v22 = vld [vmem:[#allocation2] sm:$0x3] }
  0x22   :  { %v70_v23 = vmul.f32 %v91_v21, %v66_v22 }
  0x24   :  { %v71_v24 = vsel %vm40_vm0, %v70_v23, 0.0 }
  0x25   :  { %72 = vadd.xlane.f32.xlu0 %v71_v24 }
  0x98   :  { %v73_v26 = vpop.xlane.xlu0 %72 }
  0x99   :  { %v74_v27 = vmul.f32 0.125, %v73_v26 }
  0x9b   :  { %v79_v28 = vadd.f32 %v92_v25, %v74_v27 }
  0x9d   :  { %81 = vst.msk [vmem:[%s161_s3] sm:$0x3] %vm80_vm2, %v79_v28 }
  0x9e   :  { %86 = vsyncpa [#allocation5], 1 }

</bundles_post_ra>
